<compile_context>
chip_gen: v6e
topology: v6e:2x2x1
jax: 0.10.0
libtpu: 0.0.40
codegen_flags: <defaults>
</compile_context>

<pallas_src>
import math

import jax
import jax.numpy as jnp
from jax.experimental import pallas as pl
from jax.experimental.pallas import tpu as pltpu


def _se_pixel_loss_kernel(pred_ref, target_ref, out_ref):
    # Cast to f32 on load (inputs may be bf16); arithmetic + reduction in f32.
    pred = pred_ref[...].astype(jnp.float32)      # (B, TN)
    target = target_ref[...].astype(jnp.float32)  # (B, TN)

    diff = pred - target
    sq = diff * diff                              # (B, TN)

    inv_b = 1.0 / pred_ref.shape[0]
    # Mean over batch (dim=0) -> (1, TN). Kept as a VPU/XLU axis-0 sum.
    out_ref[...] = (jnp.sum(sq, axis=0, keepdims=True) * inv_b).astype(out_ref.dtype)


def _choose_lane_tile(batch, n, itemsize,
                      *, max_lane_tile=4096, bytes_per_input_buffer=2 * 1024 * 1024):
    """Largest lane tile (multiple of 128) that keeps the double-buffered
    per-input footprint under ~bytes_per_input_buffer."""
    tn = (bytes_per_input_buffer // max(1, batch * itemsize)) // 128 * 128
    tn = max(128, min(max_lane_tile, tn))
    if tn >= n:
        # Whole feature axis fits in one block (no 128-divisibility required).
        return n
    return tn


def se_pixel_loss(pred, target):
    """Returns ((pred - target) ** 2).mean(dim=0), shape = pred.shape[1:]."""
    assert pred.shape == target.shape
    B = pred.shape[0]
    feat_shape = pred.shape[1:]
    N = math.prod(feat_shape)

    out_dtype = jnp.promote_types(pred.dtype, target.dtype)

    # Flatten features onto the lane axis; no dtype cast here (done in-kernel).
    pred2 = pred.reshape(B, N)
    tgt2 = target.reshape(B, N)

    itemsize = max(jnp.dtype(pred.dtype).itemsize, jnp.dtype(target.dtype).itemsize)
    tn = _choose_lane_tile(B, N, itemsize)
    grid = (pl.cdiv(N, tn),)

    out = pl.pallas_call(
        _se_pixel_loss_kernel,
        out_shape=jax.ShapeDtypeStruct((1, N), out_dtype),
        grid=grid,
        in_specs=[
            pl.BlockSpec((B, tn), lambda j: (0, j)),  # pred
            pl.BlockSpec((B, tn), lambda j: (0, j)),  # target
        ],
        out_specs=pl.BlockSpec((1, tn), lambda j: (0, j)),
        compiler_params=pltpu.CompilerParams(
            # Each feature block is independent -> shard across TensorCores.
            dimension_semantics=("parallel",),
            # Explicit scoped-VMEM limit with headroom; actual usage is a few MiB.
            vmem_limit_bytes=32 * 1024 * 1024,
        ),
    )(pred2, tgt2)

    return out.reshape(feat_shape)


def _reference(pred, target):
    return jnp.mean((pred - target) ** 2, axis=0)


if __name__ == "__main__":
    key = jax.random.PRNGKey(0)
    k1, k2 = jax.random.split(key)

    B, C, H, W = 2, 4, 16, 16
    pred = jax.random.normal(k1, (B, C, H, W), dtype=jnp.float32)
    target = jax.random.normal(k2, (B, C, H, W), dtype=jnp.float32)

    loss_mean = se_pixel_loss(pred, target)
    jax.block_until_ready(loss_mean)

    ref = _reference(pred, target)
    assert loss_mean.shape == (C, H, W)
    assert jnp.allclose(loss_mean, ref, atol=1e-5, rtol=1e-5)

    print("KERNEL_OK")
</pallas_src>

<mosaic_0001>
module attributes {stable_mosaic.version = 11 : i64} {
  func.func @_se_pixel_loss_kernel(%arg0: i32, %arg1: memref<2x1024xf32, #tpu.memory_space<vmem>>, %arg2: memref<2x1024xf32, #tpu.memory_space<vmem>>, %arg3: memref<1x1024xf32, #tpu.memory_space<vmem>>) attributes {dimension_semantics = [#tpu.dimension_semantics<parallel>], iteration_bounds = array<i64: 1>, scalar_prefetch = 0 : i64, scratch_operands = 0 : i64, tpu.core_type = #tpu.core_type<tc>, window_params = [{transform_indices = @transform_0, window_bounds = array<i64: 2, 1024>}, {transform_indices = @transform_1, window_bounds = array<i64: 2, 1024>}, {transform_indices = @transform_2, window_bounds = array<i64: 1, 1024>}]} {
    %c0 = arith.constant 0 : index
    %c0_0 = arith.constant 0 : index
    %0 = vector.load %arg1[%c0, %c0_0] : memref<2x1024xf32, #tpu.memory_space<vmem>>, vector<2x1024xf32>
    %c0_1 = arith.constant 0 : index
    %c0_2 = arith.constant 0 : index
    %1 = vector.load %arg2[%c0_1, %c0_2] : memref<2x1024xf32, #tpu.memory_space<vmem>>, vector<2x1024xf32>
    %2 = arith.subf %0, %1 : vector<2x1024xf32>
    %3 = arith.mulf %2, %2 : vector<2x1024xf32>
    %cst = arith.constant dense<0.000000e+00> : vector<1024xf32>
    %4 = vector.multi_reduction <add>, %3, %cst [0] : vector<2x1024xf32> to vector<1024xf32>
    %5 = vector.shape_cast %4 : vector<1024xf32> to vector<1x1024xf32>
    %cst_3 = arith.constant 5.000000e-01 : f32
    %6 = vector.broadcast %cst_3 : f32 to vector<1x1024xf32>
    %7 = arith.mulf %5, %6 : vector<1x1024xf32>
    %c0_4 = arith.constant 0 : index
    %c0_5 = arith.constant 0 : index
    %8 = vector.load %arg3[%c0_4, %c0_5] : memref<1x1024xf32, #tpu.memory_space<vmem>>, vector<1x1024xf32>
    tpu.vector_store %arg3[%c0_4, %c0_5], %7 {strides = array<i32>} : memref<1x1024xf32, #tpu.memory_space<vmem>>, vector<1x1024xf32>,
    return
  }
  func.func @transform_0(%arg0: i32) -> (i32, i32) {
    %c0_i32 = arith.constant 0 : i32
    %c0_i32_0 = arith.constant 0 : i32
    return %c0_i32, %arg0 : i32, i32
  }
  func.func @transform_1(%arg0: i32) -> (i32, i32) {
    %c0_i32 = arith.constant 0 : i32
    %c0_i32_0 = arith.constant 0 : i32
    return %c0_i32, %arg0 : i32, i32
  }
  func.func @transform_2(%arg0: i32) -> (i32, i32) {
    %c0_i32 = arith.constant 0 : i32
    %c0_i32_0 = arith.constant 0 : i32
    return %c0_i32, %arg0 : i32, i32
  }
}

</mosaic_0001>

<bundles_post_ra>
// kernel: tpu_custom_call.1
= control target key start
LH: loop header
LB: loop body
LE: loop exit
PB: predicated region body
PF: predicated region fallthrough
CT: control target
= control target key end

     0   :  { %7 = vsyncpa [#allocation3], 0  ;;  %s343_s0 = inlined_call_operand.hbm [shape: f32[2,1024], index: 0, kind: input, shape index: {}]   ;;  %s344_s1 = inlined_call_operand.hbm [shape: f32[2,1024], index: 1, kind: input, shape index: {}]   ;;  %s345_s2 = inlined_call_operand.hbm [shape: f32[1,1024], index: 2, kind: output, shape index: {}]  }
   0x1   :  { %8 = vsyncpa [#allocation6], 0 }
   0x2   :  { %9 = vsyncpa [#allocation4], 0  ;;  %s299_s9 = smov [#allocation2]   ;;  %s300_s11 = smov [#allocation5]  }
   0x3   :  { %s16_s10 = sshll.u32 %s299_s9, 4  ;;  %s26_s12 = sshll.u32 %s300_s11, 4  ;;  %s17_s10 = int_to_ptr.vmem [resolvable:$true] %s16_s10  ;;  %s27_s12 = int_to_ptr.vmem [resolvable:$true] %s26_s12 }
   0x4   :  { %s241_s13 = scalar_lea.vmem %s17_s10, 256  ;;  %p246_p1 = scmp.lt.s32.totalorder %s17_s10, %s17_s10 }
   0x5   :  { %p242_p0 = scmp.ne.s32.totalorder %s17_s10, %s241_s13  ;;  %p247_p2 = scmp.lt.s32.totalorder %s241_s13, %s241_s13 }
   0x7   :  { %p248_p3 = por %p247_p2, %p246_p1 }
   0x9   :  { %p249_p4 = pnand %p248_p3, %p242_p0 }
   0xb   :  { %252 = shalt.err (!%p249_p4)
}
   0xc   :  { %19 = dma.hbm_to_vmem [thread:$0]  %s343_s0, 256, %s17_s10, [#allocation3]  }
   0xd   :  { %s261_s16 = scalar_lea.vmem %s27_s12, 256  ;;  %p266_p6 = scmp.lt.s32.totalorder %s27_s12, %s27_s12 }
   0xe   :  { %p262_p5 = scmp.ne.s32.totalorder %s27_s12, %s261_s16  ;;  %p267_p7 = scmp.lt.s32.totalorder %s261_s16, %s261_s16 }
  0x10   :  { %p268_p8 = por %p267_p7, %p266_p6 }
  0x12   :  { %p269_p9 = pnand %p268_p8, %p262_p5 }
  0x14   :  { %272 = shalt.err (!%p269_p9)
}
  0x15   :  { %29 = dma.hbm_to_vmem [thread:$0]  %s344_s1, 256, %s27_s12, [#allocation6]  }
  0x16   :  { %293 = dma.done.wait [#allocation3], 256  }
  0x17   :  { %294 = vsyncadd [#allocation3], 4294967040 }
  0x18   :  { %295 = dma.done.wait [#allocation6], 256  }
  0x19   :  { %296 = vsyncadd [#allocation6], 4294967040  ;;  %v50_v0 = vlaneseq  ;;  %v301_v1 = vmov 1983009808   ;;  %v36_v5 = vld [vmem:[#allocation2] sm:$0xff]  ;;  %v37_v6 = vld [vmem:[#allocation2 + $0x8] sm:$0xff] }
  0x1a   :  { %v48_v2 = vunpack.c.l.s4 %v301_v1  ;;  %v38_v7 = vld [vmem:[#allocation5] sm:$0xff]  ;;  %v39_v8 = vld [vmem:[#allocation5 + $0x8] sm:$0xff]  ;;  %v302_v13 = vmov 1966171168   ;;  %vm88_vm0 = vcmask 1041408   ;;  %s303_s0 = smov [#allocation7]  }
  0x1b   :  { %v325_v4 = vshrl.u32 %v50_v0, 7  ;;  %v40_v9 = vsub.f32 %v36_v5, %v38_v7  ;;  %v41_v11 = vsub.f32 %v37_v6, %v39_v8  ;;  %v328_v14 = vunpack.c.l.s4 %v302_v13  ;;  %s218_s1 = sshll.u32 %s303_s0, 4  ;;  %s219_s1 = int_to_ptr.vmem [resolvable:$true] %s218_s1 }
  0x1c   :  { %v49_v3 = vunpack.c.0.s8 %v48_v2  ;;  %s273_s19 = scalar_lea.vmem %s219_s1, 128  ;;  %p278_p11 = scmp.lt.s32.totalorder %s219_s1, %s219_s1 }
  0x1d   :  { %v42_v12 = vmul.f32 %v40_v9, %v40_v9  ;;  %v43_v15 = vmul.f32 %v41_v11, %v41_v11  ;;  %v167_v23 = vunpack.c.0.s8 %v328_v14  ;;  %p274_p10 = scmp.ne.s32.totalorder %s219_s1, %s273_s19  ;;  %p279_p12 = scmp.lt.s32.totalorder %s273_s19, %s273_s19 }
  0x1e   :  { %v52_v10 = vsub.s32 %v49_v3, %v325_v4 }
  0x1f   :  { %v46_v16 = vcombine.high %v42_v12, %v42_v12  ;;  %v63_v18 = vcombine.high %v43_v15, %v43_v15  ;;  %p280_p13 = por %p279_p12, %p278_p11 }
  0x20   :  { %v53_v17 = vrot.slane %v42_v12, %v52_v10  ;;  %v70_v19 = vrot.slane %v43_v15, %v52_v10 }
  0x21   :  { %v60_v20 = vrot.slane %v46_v16, %v52_v10  ;;  %v77_v24 = vrot.slane %v63_v18, %v52_v10  ;;  %p281_p0 = pnand %p280_p13, %p274_p10 }
  0x22   :  { %v61_v21 = vcombine.high %v53_v17, %v53_v17  ;;  %v89_v22 = vsel %vm88_vm0, %v53_v17, 0.0  ;;  %v78_v25 = vcombine.high %v70_v19, %v70_v19  ;;  %v117_v27 = vsel %vm88_vm0, %v70_v19, 0.0 }
  0x23   :  { %v90_v26 = vrot.slane %v89_v22, 4  ;;  %v62_v28 = vcombine.high %v60_v20, %v60_v20  ;;  %v103_v30 = vsel %vm88_vm0, %v60_v20, 0.0  ;;  %v118_v31 = vrot.slane %v117_v27, 4 }
  0x24   :  { %v96_v29 = vsel %vm88_vm0, %v61_v21, 0.0  ;;  %v79_v32 = vcombine.high %v77_v24, %v77_v24  ;;  %v104_v35 = vrot.slane %v103_v30, 4  ;;  %v124_v38 = vsel %vm88_vm0, %v78_v25, 0.0 }
  0x25   :  { %v91_v33 = vadd.f32 %v90_v26, %v89_v22  ;;  %v97_v34 = vrot.slane %v96_v29, 4  ;;  %v110_v36 = vsel %vm88_vm0, %v62_v28, 0.0  ;;  %v119_v37 = vadd.f32 %v118_v31, %v117_v27 }
  0x26   :  { %v131_v39 = vsel %vm88_vm0, %v77_v24, 0.0  ;;  %v105_v42 = vadd.f32 %v104_v35, %v103_v30  ;;  %v111_v43 = vrot.slane %v110_v36, 4  ;;  %v125_v45 = vrot.slane %v124_v38, 4 }
  0x27   :  { %v92_v40 = vrot.slane %v91_v33, 2  ;;  %v98_v41 = vadd.f32 %v97_v34, %v96_v29  ;;  %v120_v44 = vrot.slane %v119_v37, 2  ;;  %v132_v46 = vrot.slane %v131_v39, 4 }
  0x28   :  { %v138_v47 = vsel %vm88_vm0, %v79_v32, 0.0  ;;  %v106_v50 = vrot.slane %v105_v42, 2  ;;  %v112_v51 = vadd.f32 %v111_v43, %v110_v36  ;;  %v126_v53 = vadd.f32 %v125_v45, %v124_v38 }
  0x29   :  { %v93_v48 = vadd.f32 %v92_v40, %v91_v33  ;;  %v99_v49 = vrot.slane %v98_v41, 2  ;;  %v121_v52 = vadd.f32 %v120_v44, %v119_v37  ;;  %v133_v54 = vadd.f32 %v132_v46, %v131_v39 }
  0x2a   :  { %v139_v55 = vrot.slane %v138_v47, 4  ;;  %v107_v58 = vadd.f32 %v106_v50, %v105_v42  ;;  %v113_v59 = vrot.slane %v112_v51, 2  ;;  %v127_v61 = vrot.slane %v126_v53, 2 }
  0x2b   :  { %v94_v56 = vrot.slane %v93_v48, 1  ;;  %v100_v57 = vadd.f32 %v99_v49, %v98_v41  ;;  %v122_v60 = vrot.slane %v121_v52, 1  ;;  %v134_v62 = vrot.slane %v133_v54, 2 }
  0x2c   :  { %v140_v63 = vadd.f32 %v139_v55, %v138_v47  ;;  %v108_v2 = vrot.slane %v107_v58, 1  ;;  %v114_v3 = vadd.f32 %v113_v59, %v112_v51  ;;  %v128_v6 = vadd.f32 %v127_v61, %v126_v53 }
  0x2d   :  { %v95_v0 = vadd.f32 %v94_v56, %v93_v48  ;;  %v101_v1 = vrot.slane %v100_v57, 1  ;;  %v123_v5 = vadd.f32 %v122_v60, %v121_v52  ;;  %v135_v7 = vadd.f32 %v134_v62, %v133_v54 }
  0x2e   :  { %v141_v8 = vrot.slane %v140_v63, 2  ;;  %v109_v10 = vadd.f32 %v108_v2, %v107_v58  ;;  %v115_v11 = vrot.slane %v114_v3, 1  ;;  %v129_v13 = vrot.slane %v128_v6, 1 }
  0x2f   :  { %v102_v9 = vadd.f32 %v101_v1, %v100_v57  ;;  %v145_v12 = vmul.f32 0.5, %v95_v0  ;;  %v136_v14 = vrot.slane %v135_v7, 1  ;;  %v170_v19 = vsub.s32 %v167_v23, %v325_v4 }
  0x30   :  { %v142_v15 = vadd.f32 %v141_v8, %v140_v63  ;;  %v116_v16 = vadd.f32 %v115_v11, %v114_v3  ;;  %v147_v18 = vmul.f32 0.5, %v109_v10  ;;  %v130_v20 = vadd.f32 %v129_v13, %v128_v6 }
  0x31   :  { %v146_v17 = vmul.f32 0.5, %v102_v9  ;;  %v137_v21 = vadd.f32 %v136_v14, %v135_v7  ;;  %v149_v24 = vmul.f32 0.5, %v123_v5 }
  0x32   :  { %v143_v22 = vrot.slane %v142_v15, 1  ;;  %v148_v25 = vmul.f32 0.5, %v116_v16  ;;  %v150_v28 = vmul.f32 0.5, %v130_v20 }
  0x33   :  { %v161_v26 = vcombine.low %v145_v12, %v146_v17  ;;  %v151_v29 = vmul.f32 0.5, %v137_v21 }
  0x34   :  { %v144_v27 = vadd.f32 %v143_v22, %v142_v15  ;;  %v162_v30 = vcombine.low %v147_v18, %v148_v25  ;;  %v163_v33 = vcombine.low %v149_v24, %v150_v28 }
  0x35   :  { %v171_v31 = vrot.slane %v161_v26, %v170_v19 }
  0x36   :  { %v152_v32 = vmul.f32 0.5, %v144_v27  ;;  %v178_v34 = vrot.slane %v162_v30, %v170_v19  ;;  %v185_v36 = vrot.slane %v163_v33, %v170_v19 }
  0x38   :  { %v164_v35 = vcombine.low %v151_v29, %v152_v32  ;;  %v193_v37 = vcombine.low %v171_v31, %v178_v34 }
  0x3a   :  { %v192_v38 = vrot.slane %v164_v35, %v170_v19  ;;  %v201_v4 = vrot.slane %v193_v37, %v170_v19 }
  0x3c   :  { %v194_v39 = vcombine.low %v185_v36, %v192_v38 }
  0x3e   :  { %v208_v23 = vrot.slane %v194_v39, %v170_v19 }
  0x40   :  { %v209_v40 = vcombine.low %v201_v4, %v208_v23 }
  0x42   :  { %211 = vst [vmem:[#allocation7] sm:$0xff] %v209_v40 }
  0x43   :  { %284 = shalt.err (!%p281_p0)
}
  0x44   :  { %221 = dma.vmem_to_hbm [thread:$0]  %s219_s1, 128, %s345_s2, [#allocation4]  }
  0x45   :  { %297 = dma.done.wait [#allocation4], 128  }
  0x46   :  { %298 = vsyncadd [#allocation4], 4294967168 }
  0x47   :  { %225 = vsyncpa [#allocation3], 1 }
  0x48   :  { %226 = vsyncpa [#allocation6], 1 }
  0x49   :  { %227 = vsyncpa [#allocation4], 1 }

</bundles_post_ra>
